<compile_context>
chip_gen: v7x
topology: tpu7x:2x2x1
jax: 0.10.0
libtpu: 0.0.40
codegen_flags: <defaults>
</compile_context>

<pallas_src>
import math

import jax
import jax.numpy as jnp
from jax.experimental import pallas as pl
from jax.experimental.pallas import tpu as pltpu


def _gru_cell_kernel(x_ref, h_ref, wx_ref, wh_ref, whh_ref, b_ref, out_ref):
    """One fused GRU-cell step on a (batch_tile, ...) block."""
    H = out_ref.shape[-1]
    h = h_ref[...]                                    # (TB, H) f32, kept for the blend
    x_bf = x_ref[...].astype(jnp.bfloat16)            # matmul operands in bf16
    h_bf = h.astype(jnp.bfloat16)

    # --- reset gate first: its output feeds the second hidden-side matmul ---
    r_pre = (
        jnp.dot(x_bf, wx_ref[:, 0:H], preferred_element_type=jnp.float32)
        + jnp.dot(h_bf, wh_ref[:, 0:H], preferred_element_type=jnp.float32)
        + b_ref[:, 0:H]
    )
    rt = jax.nn.sigmoid(r_pre)                        # EUP
    hr_bf = (h * rt).astype(jnp.bfloat16)             # VPU; overlaps the next dot

    # --- update gate + x-contribution of the candidate, fused over 2H columns ---
    zc_pre = (
        jnp.dot(x_bf, wx_ref[:, H:3 * H], preferred_element_type=jnp.float32)
        + b_ref[:, H:3 * H]
    )                                                 # (TB, 2H) f32
    z_pre = zc_pre[:, 0:H] + jnp.dot(
        h_bf, wh_ref[:, H:2 * H], preferred_element_type=jnp.float32)
    c_pre = zc_pre[:, H:2 * H] + jnp.dot(
        hr_bf, whh_ref[...], preferred_element_type=jnp.float32)

    zt = jax.nn.sigmoid(z_pre)
    htilde = jnp.tanh(c_pre)

    # h_new = (1 - zt) * h + zt * htilde  ==  h + zt * (htilde - h)
    out_ref[...] = h + zt * (htilde - h)


def _vmem_limit_bytes(batch_tile, E, H):
    """Working-set-derived VMEM limit (weights single-buffered, activations x2)."""
    weight_bytes = (E * 3 * H + H * 2 * H + H * H) * 2        # bf16, single-buffered
    bias_bytes = 3 * H * 4
    act_bytes = 2 * (batch_tile * E + 2 * batch_tile * H) * 4  # double-buffered x/h/out f32
    headroom = 4 * (1 << 20)                                   # in-kernel intermediates
    need = (weight_bytes + bias_bytes + act_bytes) * 3 // 2 + headroom
    return int(min(max(need, 32 * (1 << 20)), 100 * (1 << 20)))


def gru_unit_forward_pallas(x, h, w_x, w_h, w_hh, b, *, batch_tile=None):
    """GRU cell forward.

    x      : (B, E)    f32
    h      : (B, H)    f32
    w_x    : (E, 3H)   bf16   [Wxr^T | Wxz^T | Wxh^T]
    w_h    : (H, 2H)   bf16   [Whr^T | Whz^T]
    w_hh   : (H, H)    bf16   Whh^T
    b      : (1, 3H)   f32    [br | bz | bh]  (hidden-side linears have no bias)
    returns: (B, H)    f32 new hidden state
    """
    B, E = x.shape
    Bh, H = h.shape
    assert Bh == B
    assert w_x.shape == (E, 3 * H)
    assert w_h.shape == (H, 2 * H)
    assert w_hh.shape == (H, H)
    assert b.shape == (1, 3 * H)

    if batch_tile is None:
        # MXU-sized tiles and a real (>=2 step) grid for large batches; a single
        # full-batch tile otherwise.  256 matches the v6e/v7x 256x256 MXU and is
        # a clean multiple of v5e's 128.
        batch_tile = 256 if (B > 256 and B % 256 == 0) else B
    batch_tile = min(batch_tile, B)
    assert B % batch_tile == 0
    if batch_tile != B:
        # f32 activation tiles -> sublane alignment (would be 16 for bf16 tiles).
        assert batch_tile % 8 == 0

    grid = (B // batch_tile,)

    def _build(single_buffer_weights):
        def _const_spec(shape):
            if single_buffer_weights:
                # Constant index_map -> never re-DMA'd; one buffer is enough.
                return pl.BlockSpec(shape, lambda i: (0, 0),
                                    pipeline_mode=pl.Buffered(1))
            return pl.BlockSpec(shape, lambda i: (0, 0))

        in_specs = [
            pl.BlockSpec((batch_tile, E), lambda i: (i, 0)),   # x tile
            pl.BlockSpec((batch_tile, H), lambda i: (i, 0)),   # h tile
            _const_spec((E, 3 * H)),                           # input-side gate weights
            _const_spec((H, 2 * H)),                           # hidden-side r/z weights
            _const_spec((H, H)),                               # candidate hidden weights
            _const_spec((1, 3 * H)),                           # fused biases
        ]
        out_specs = pl.BlockSpec((batch_tile, H), lambda i: (i, 0))

        grid_spec = pltpu.PrefetchScalarGridSpec(
            num_scalar_prefetch=0,
            grid=grid,
            in_specs=in_specs,
            out_specs=out_specs,
        )
        return pl.pallas_call(
            _gru_cell_kernel,
            out_shape=jax.ShapeDtypeStruct((B, H), jnp.float32),
            grid_spec=grid_spec,
            compiler_params=pltpu.CompilerParams(
                dimension_semantics=("parallel",),             # batch tiles independent
                vmem_limit_bytes=_vmem_limit_bytes(batch_tile, E, H),
            ),
        )

    try:
        return _build(True)(x, h, w_x, w_h, w_hh, b)
    except Exception:
        # Fallback for environments where pipeline_mode=pl.Buffered(1) is not
        # accepted on pallas_call BlockSpecs; weights then get default 2-deep
        # buffering (more VMEM, identical results).
        return _build(False)(x, h, w_x, w_h, w_hh, b)


def pack_gru_weights(wxr, wxz, wxh, whr, whz, whh, br, bz, bh):
    """Packs PyTorch-layout (out, in) Linear weights into the fused kernel params."""
    H, E = wxr.shape
    w_x = jnp.concatenate([wxr.T, wxz.T, wxh.T], axis=1).astype(jnp.bfloat16)   # (E, 3H)
    w_h = jnp.concatenate([whr.T, whz.T], axis=1).astype(jnp.bfloat16)          # (H, 2H)
    w_hh = whh.T.astype(jnp.bfloat16)                                           # (H, H)
    b = jnp.concatenate([br, bz, bh]).reshape(1, 3 * H).astype(jnp.float32)     # (1, 3H)
    return w_x, w_h, w_hh, b


def gru_unit_reference(x, h, wxr, wxz, wxh, whr, whz, whh, br, bz, bh):
    """Pure-JAX f32 reference mirroring PyTorch GRU_unit.forward exactly."""
    rt = jax.nn.sigmoid(x @ wxr.T + br + h @ whr.T)
    zt = jax.nn.sigmoid(x @ wxz.T + bz + h @ whz.T)
    htilde = jnp.tanh(x @ wxh.T + bh + (h * rt) @ whh.T)
    return (1.0 - zt) * h + zt * htilde


if __name__ == "__main__":
    # Small but lane-aligned shapes: E, H multiples of 128 keep gate slices and
    # the output store lane-dense (the review's alignment recommendation).
    emb_size = 128
    hidden_size = 128
    batch_size = 8
    dp_keep_prob = 1.0  # stored by the module, unused in forward

    key = jax.random.PRNGKey(0)
    ks = jax.random.split(key, 11)
    k = 1.0 / math.sqrt(float(hidden_size))

    # PyTorch Linear layout: weight is (out_features, in_features).
    wxr = jax.random.uniform(ks[0], (hidden_size, emb_size), jnp.float32, -k, k)
    wxz = jax.random.uniform(ks[1], (hidden_size, emb_size), jnp.float32, -k, k)
    wxh = jax.random.uniform(ks[2], (hidden_size, emb_size), jnp.float32, -k, k)
    whr = jax.random.uniform(ks[3], (hidden_size, hidden_size), jnp.float32, -k, k)
    whz = jax.random.uniform(ks[4], (hidden_size, hidden_size), jnp.float32, -k, k)
    whh = jax.random.uniform(ks[5], (hidden_size, hidden_size), jnp.float32, -k, k)
    br = jax.random.uniform(ks[6], (hidden_size,), jnp.float32, -k, k)
    bz = jax.random.uniform(ks[7], (hidden_size,), jnp.float32, -k, k)
    bh = jax.random.uniform(ks[8], (hidden_size,), jnp.float32, -k, k)

    # Example inputs: an embedded token batch and a previous hidden state.
    x = jax.random.uniform(ks[9], (batch_size, emb_size), jnp.float32, -1.0, 1.0)
    h0 = jax.random.uniform(ks[10], (batch_size, hidden_size), jnp.float32, -1.0, 1.0)

    w_x, w_h, w_hh, b = pack_gru_weights(wxr, wxz, wxh, whr, whz, whh, br, bz, bh)

    h_new = gru_unit_forward_pallas(x, h0, w_x, w_h, w_hh, b)
    jax.block_until_ready(h_new)

    h_ref = gru_unit_reference(x, h0, wxr, wxz, wxh, whr, whz, whh, br, bz, bh)

    assert h_new.shape == (batch_size, hidden_size)
    max_err = float(jnp.max(jnp.abs(h_new - h_ref)))
    # bf16 matmuls with f32 accumulation + f32 epilogue -> loosened tolerance.
    assert max_err < 1e-2, max_err

    print("KERNEL_OK")
</pallas_src>

<mosaic_0001>
module attributes {stable_mosaic.version = 11 : i64} {
  func.func @_gru_cell_kernel(%arg0: i32, %arg1: memref<8x128xf32, #tpu.memory_space<vmem>>, %arg2: memref<8x128xf32, #tpu.memory_space<vmem>>, %arg3: memref<128x384xbf16, #tpu.memory_space<vmem>>, %arg4: memref<128x256xbf16, #tpu.memory_space<vmem>>, %arg5: memref<128x128xbf16, #tpu.memory_space<vmem>>, %arg6: memref<1x384xf32, #tpu.memory_space<vmem>>, %arg7: memref<8x128xf32, #tpu.memory_space<vmem>>) attributes {dimension_semantics = [#tpu.dimension_semantics<parallel>], iteration_bounds = array<i64: 1>, scalar_prefetch = 0 : i64, scratch_operands = 0 : i64, tpu.core_type = #tpu.core_type<tc>, window_params = [{transform_indices = @transform_0, window_bounds = array<i64: 8, 128>}, {transform_indices = @transform_1, window_bounds = array<i64: 8, 128>}, {pipeline_mode = #tpu.pipeline_mode<synchronous>, transform_indices = @transform_2, window_bounds = array<i64: 128, 384>}, {pipeline_mode = #tpu.pipeline_mode<synchronous>, transform_indices = @transform_3, window_bounds = array<i64: 128, 256>}, {pipeline_mode = #tpu.pipeline_mode<synchronous>, transform_indices = @transform_4, window_bounds = array<i64: 128, 128>}, {pipeline_mode = #tpu.pipeline_mode<synchronous>, transform_indices = @transform_5, window_bounds = array<i64: 1, 384>}, {transform_indices = @transform_6, window_bounds = array<i64: 8, 128>}]} {
    %c0 = arith.constant 0 : index
    %c0_0 = arith.constant 0 : index
    %0 = vector.load %arg2[%c0, %c0_0] : memref<8x128xf32, #tpu.memory_space<vmem>>, vector<8x128xf32>
    %c0_1 = arith.constant 0 : index
    %c0_2 = arith.constant 0 : index
    %1 = vector.load %arg1[%c0_1, %c0_2] : memref<8x128xf32, #tpu.memory_space<vmem>>, vector<8x128xf32>
    %2 = arith.truncf %1 : vector<8x128xf32> to vector<8x128xbf16>
    %3 = arith.truncf %0 : vector<8x128xf32> to vector<8x128xbf16>
    %c0_3 = arith.constant 0 : index
    %c0_4 = arith.constant 0 : index
    %4 = vector.load %arg3[%c0_3, %c0_4] : memref<128x384xbf16, #tpu.memory_space<vmem>>, vector<128x128xbf16>
    %cst = arith.constant dense<0.000000e+00> : vector<8x128xf32>
    %5 = tpu.matmul %2, %4, %cst {dimension_numbers = #tpu.dot_dimension_numbers<[1], [0], [0], [1], [0, 0, 1, 1], [], []>} : vector<8x128xbf16>, vector<128x128xbf16>, vector<8x128xf32> -> vector<8x128xf32>
    %c0_5 = arith.constant 0 : index
    %c0_6 = arith.constant 0 : index
    %6 = vector.load %arg4[%c0_5, %c0_6] : memref<128x256xbf16, #tpu.memory_space<vmem>>, vector<128x128xbf16>
    %cst_7 = arith.constant dense<0.000000e+00> : vector<8x128xf32>
    %7 = tpu.matmul %3, %6, %cst_7 {dimension_numbers = #tpu.dot_dimension_numbers<[1], [0], [0], [1], [0, 0, 1, 1], [], []>} : vector<8x128xbf16>, vector<128x128xbf16>, vector<8x128xf32> -> vector<8x128xf32>
    %8 = arith.addf %5, %7 : vector<8x128xf32>
    %c0_8 = arith.constant 0 : index
    %c0_9 = arith.constant 0 : index
    %9 = vector.load %arg6[%c0_8, %c0_9] : memref<1x384xf32, #tpu.memory_space<vmem>>, vector<1x128xf32>
    %10 = vector.broadcast %9 : vector<1x128xf32> to vector<8x128xf32>
    %11 = arith.addf %8, %10 : vector<8x128xf32>
    %12 = arith.negf %11 : vector<8x128xf32>
    %13 = math.exp %12 : vector<8x128xf32>
    %cst_10 = arith.constant 1.000000e+00 : f32
    %14 = vector.broadcast %cst_10 : f32 to vector<8x128xf32>
    %15 = arith.addf %14, %13 : vector<8x128xf32>
    %16 = arith.divf %14, %15 : vector<8x128xf32>
    %17 = arith.mulf %0, %16 : vector<8x128xf32>
    %18 = arith.truncf %17 : vector<8x128xf32> to vector<8x128xbf16>
    %c0_11 = arith.constant 0 : index
    %c128 = arith.constant 128 : index
    %19 = vector.load %arg3[%c0_11, %c128] : memref<128x384xbf16, #tpu.memory_space<vmem>>, vector<128x256xbf16>
    %cst_12 = arith.constant dense<0.000000e+00> : vector<8x256xf32>
    %20 = tpu.matmul %2, %19, %cst_12 {dimension_numbers = #tpu.dot_dimension_numbers<[1], [0], [0], [1], [0, 0, 1, 1], [], []>} : vector<8x128xbf16>, vector<128x256xbf16>, vector<8x256xf32> -> vector<8x256xf32>
    %c0_13 = arith.constant 0 : index
    %c128_14 = arith.constant 128 : index
    %21 = vector.load %arg6[%c0_13, %c128_14] : memref<1x384xf32, #tpu.memory_space<vmem>>, vector<1x256xf32>
    %22 = vector.broadcast %21 : vector<1x256xf32> to vector<8x256xf32>
    %23 = arith.addf %20, %22 : vector<8x256xf32>
    %24 = vector.extract_strided_slice %23 {offsets = [0, 0], sizes = [8, 128], strides = [1, 1]} : vector<8x256xf32> to vector<8x128xf32>
    %c0_15 = arith.constant 0 : index
    %c128_16 = arith.constant 128 : index
    %25 = vector.load %arg4[%c0_15, %c128_16] : memref<128x256xbf16, #tpu.memory_space<vmem>>, vector<128x128xbf16>
    %cst_17 = arith.constant dense<0.000000e+00> : vector<8x128xf32>
    %26 = tpu.matmul %3, %25, %cst_17 {dimension_numbers = #tpu.dot_dimension_numbers<[1], [0], [0], [1], [0, 0, 1, 1], [], []>} : vector<8x128xbf16>, vector<128x128xbf16>, vector<8x128xf32> -> vector<8x128xf32>
    %27 = arith.addf %24, %26 : vector<8x128xf32>
    %28 = vector.extract_strided_slice %23 {offsets = [0, 128], sizes = [8, 128], strides = [1, 1]} : vector<8x256xf32> to vector<8x128xf32>
    %c0_18 = arith.constant 0 : index
    %c0_19 = arith.constant 0 : index
    %29 = vector.load %arg5[%c0_18, %c0_19] : memref<128x128xbf16, #tpu.memory_space<vmem>>, vector<128x128xbf16>
    %cst_20 = arith.constant dense<0.000000e+00> : vector<8x128xf32>
    %30 = tpu.matmul %18, %29, %cst_20 {dimension_numbers = #tpu.dot_dimension_numbers<[1], [0], [0], [1], [0, 0, 1, 1], [], []>} : vector<8x128xbf16>, vector<128x128xbf16>, vector<8x128xf32> -> vector<8x128xf32>
    %31 = arith.addf %28, %30 : vector<8x128xf32>
    %32 = arith.negf %27 : vector<8x128xf32>
    %33 = math.exp %32 : vector<8x128xf32>
    %cst_21 = arith.constant 1.000000e+00 : f32
    %34 = vector.broadcast %cst_21 : f32 to vector<8x128xf32>
    %35 = arith.addf %34, %33 : vector<8x128xf32>
    %36 = arith.divf %34, %35 : vector<8x128xf32>
    %37 = math.tanh %31 : vector<8x128xf32>
    %38 = arith.subf %37, %0 : vector<8x128xf32>
    %39 = arith.mulf %36, %38 : vector<8x128xf32>
    %40 = arith.addf %0, %39 : vector<8x128xf32>
    %c0_22 = arith.constant 0 : index
    %c0_23 = arith.constant 0 : index
    %41 = vector.load %arg7[%c0_22, %c0_23] : memref<8x128xf32, #tpu.memory_space<vmem>>, vector<8x128xf32>
    tpu.vector_store %arg7[%c0_22, %c0_23], %40 {strides = array<i32>} : memref<8x128xf32, #tpu.memory_space<vmem>>, vector<8x128xf32>,
    return
  }
  func.func @transform_0(%arg0: i32) -> (i32, i32) {
    %c0_i32 = arith.constant 0 : i32
    %c0_i32_0 = arith.constant 0 : i32
    return %arg0, %c0_i32 : i32, i32
  }
  func.func @transform_1(%arg0: i32) -> (i32, i32) {
    %c0_i32 = arith.constant 0 : i32
    %c0_i32_0 = arith.constant 0 : i32
    return %arg0, %c0_i32 : i32, i32
  }
  func.func @transform_2(%arg0: i32) -> (i32, i32) {
    %c0_i32 = arith.constant 0 : i32
    %c0_i32_0 = arith.constant 0 : i32
    %c0_i32_1 = arith.constant 0 : i32
    return %c0_i32, %c0_i32_0 : i32, i32
  }
  func.func @transform_3(%arg0: i32) -> (i32, i32) {
    %c0_i32 = arith.constant 0 : i32
    %c0_i32_0 = arith.constant 0 : i32
    %c0_i32_1 = arith.constant 0 : i32
    return %c0_i32, %c0_i32_0 : i32, i32
  }
  func.func @transform_4(%arg0: i32) -> (i32, i32) {
    %c0_i32 = arith.constant 0 : i32
    %c0_i32_0 = arith.constant 0 : i32
    %c0_i32_1 = arith.constant 0 : i32
    return %c0_i32, %c0_i32_0 : i32, i32
  }
  func.func @transform_5(%arg0: i32) -> (i32, i32) {
    %c0_i32 = arith.constant 0 : i32
    %c0_i32_0 = arith.constant 0 : i32
    %c0_i32_1 = arith.constant 0 : i32
    return %c0_i32, %c0_i32_0 : i32, i32
  }
  func.func @transform_6(%arg0: i32) -> (i32, i32) {
    %c0_i32 = arith.constant 0 : i32
    %c0_i32_0 = arith.constant 0 : i32
    return %arg0, %c0_i32 : i32, i32
  }
}

module attributes {stable_mosaic.version = 11 : i64} {
  func.func @_gru_cell_kernel(%arg0: i32, %arg1: memref<8x128xf32, #tpu.memory_space<vmem>>, %arg2: memref<8x128xf32, #tpu.memory_space<vmem>>, %arg3: memref<128x384xbf16, #tpu.memory_space<vmem>>, %arg4: memref<128x256xbf16, #tpu.memory_space<vmem>>, %arg5: memref<128x128xbf16, #tpu.memory_space<vmem>>, %arg6: memref<1x384xf32, #tpu.memory_space<vmem>>, %arg7: memref<8x128xf32, #tpu.memory_space<vmem>>) attributes {dimension_semantics = [#tpu.dimension_semantics<parallel>], iteration_bounds = array<i64: 1>, scalar_prefetch = 0 : i64, scratch_operands = 0 : i64, tpu.core_type = #tpu.core_type<tc>, window_params = [{transform_indices = @transform_0, window_bounds = array<i64: 8, 128>}, {transform_indices = @transform_1, window_bounds = array<i64: 8, 128>}, {pipeline_mode = #tpu.pipeline_mode<synchronous>, transform_indices = @transform_2, window_bounds = array<i64: 128, 384>}, {pipeline_mode = #tpu.pipeline_mode<synchronous>, transform_indices = @transform_3, window_bounds = array<i64: 128, 256>}, {pipeline_mode = #tpu.pipeline_mode<synchronous>, transform_indices = @transform_4, window_bounds = array<i64: 128, 128>}, {pipeline_mode = #tpu.pipeline_mode<synchronous>, transform_indices = @transform_5, window_bounds = array<i64: 1, 384>}, {transform_indices = @transform_6, window_bounds = array<i64: 8, 128>}]} {
    %c0 = arith.constant 0 : index
    %c0_0 = arith.constant 0 : index
    %0 = vector.load %arg2[%c0, %c0_0] : memref<8x128xf32, #tpu.memory_space<vmem>>, vector<8x128xf32>
    %c0_1 = arith.constant 0 : index
    %c0_2 = arith.constant 0 : index
    %1 = vector.load %arg1[%c0_1, %c0_2] : memref<8x128xf32, #tpu.memory_space<vmem>>, vector<8x128xf32>
    %2 = arith.truncf %1 : vector<8x128xf32> to vector<8x128xbf16>
    %3 = arith.truncf %0 : vector<8x128xf32> to vector<8x128xbf16>
    %c0_3 = arith.constant 0 : index
    %c0_4 = arith.constant 0 : index
    %4 = vector.load %arg3[%c0_3, %c0_4] : memref<128x384xbf16, #tpu.memory_space<vmem>>, vector<128x128xbf16>
    %cst = arith.constant dense<0.000000e+00> : vector<8x128xf32>
    %5 = tpu.matmul %2, %4, %cst {dimension_numbers = #tpu.dot_dimension_numbers<[1], [0], [0], [1], [0, 0, 1, 1], [], []>} : vector<8x128xbf16>, vector<128x128xbf16>, vector<8x128xf32> -> vector<8x128xf32>
    %c0_5 = arith.constant 0 : index
    %c0_6 = arith.constant 0 : index
    %6 = vector.load %arg4[%c0_5, %c0_6] : memref<128x256xbf16, #tpu.memory_space<vmem>>, vector<128x128xbf16>
    %cst_7 = arith.constant dense<0.000000e+00> : vector<8x128xf32>
    %7 = tpu.matmul %3, %6, %cst_7 {dimension_numbers = #tpu.dot_dimension_numbers<[1], [0], [0], [1], [0, 0, 1, 1], [], []>} : vector<8x128xbf16>, vector<128x128xbf16>, vector<8x128xf32> -> vector<8x128xf32>
    %8 = arith.addf %5, %7 : vector<8x128xf32>
    %c0_8 = arith.constant 0 : index
    %c0_9 = arith.constant 0 : index
    %9 = vector.load %arg6[%c0_8, %c0_9] : memref<1x384xf32, #tpu.memory_space<vmem>>, vector<1x128xf32>
    %10 = vector.broadcast %9 : vector<1x128xf32> to vector<8x128xf32>
    %11 = arith.addf %8, %10 : vector<8x128xf32>
    %12 = arith.negf %11 : vector<8x128xf32>
    %13 = math.exp %12 : vector<8x128xf32>
    %cst_10 = arith.constant 1.000000e+00 : f32
    %14 = vector.broadcast %cst_10 : f32 to vector<8x128xf32>
    %15 = arith.addf %14, %13 : vector<8x128xf32>
    %16 = arith.divf %14, %15 : vector<8x128xf32>
    %17 = arith.mulf %0, %16 : vector<8x128xf32>
    %18 = arith.truncf %17 : vector<8x128xf32> to vector<8x128xbf16>
    %c0_11 = arith.constant 0 : index
    %c128 = arith.constant 128 : index
    %19 = vector.load %arg3[%c0_11, %c128] : memref<128x384xbf16, #tpu.memory_space<vmem>>, vector<128x256xbf16>
    %cst_12 = arith.constant dense<0.000000e+00> : vector<8x256xf32>
    %20 = tpu.matmul %2, %19, %cst_12 {dimension_numbers = #tpu.dot_dimension_numbers<[1], [0], [0], [1], [0, 0, 1, 1], [], []>} : vector<8x128xbf16>, vector<128x256xbf16>, vector<8x256xf32> -> vector<8x256xf32>
    %c0_13 = arith.constant 0 : index
    %c128_14 = arith.constant 128 : index
    %21 = vector.load %arg6[%c0_13, %c128_14] : memref<1x384xf32, #tpu.memory_space<vmem>>, vector<1x256xf32>
    %22 = vector.broadcast %21 : vector<1x256xf32> to vector<8x256xf32>
    %23 = arith.addf %20, %22 : vector<8x256xf32>
    %24 = vector.extract_strided_slice %23 {offsets = [0, 0], sizes = [8, 128], strides = [1, 1]} : vector<8x256xf32> to vector<8x128xf32>
    %c0_15 = arith.constant 0 : index
    %c128_16 = arith.constant 128 : index
    %25 = vector.load %arg4[%c0_15, %c128_16] : memref<128x256xbf16, #tpu.memory_space<vmem>>, vector<128x128xbf16>
    %cst_17 = arith.constant dense<0.000000e+00> : vector<8x128xf32>
    %26 = tpu.matmul %3, %25, %cst_17 {dimension_numbers = #tpu.dot_dimension_numbers<[1], [0], [0], [1], [0, 0, 1, 1], [], []>} : vector<8x128xbf16>, vector<128x128xbf16>, vector<8x128xf32> -> vector<8x128xf32>
    %27 = arith.addf %24, %26 : vector<8x128xf32>
    %28 = vector.extract_strided_slice %23 {offsets = [0, 128], sizes = [8, 128], strides = [1, 1]} : vector<8x256xf32> to vector<8x128xf32>
    %c0_18 = arith.constant 0 : index
    %c0_19 = arith.constant 0 : index
    %29 = vector.load %arg5[%c0_18, %c0_19] : memref<128x128xbf16, #tpu.memory_space<vmem>>, vector<128x128xbf16>
    %cst_20 = arith.constant dense<0.000000e+00> : vector<8x128xf32>
    %30 = tpu.matmul %18, %29, %cst_20 {dimension_numbers = #tpu.dot_dimension_numbers<[1], [0], [0], [1], [0, 0, 1, 1], [], []>} : vector<8x128xbf16>, vector<128x128xbf16>, vector<8x128xf32> -> vector<8x128xf32>
    %31 = arith.addf %28, %30 : vector<8x128xf32>
    %32 = arith.negf %27 : vector<8x128xf32>
    %33 = math.exp %32 : vector<8x128xf32>
    %cst_21 = arith.constant 1.000000e+00 : f32
    %34 = vector.broadcast %cst_21 : f32 to vector<8x128xf32>
    %35 = arith.addf %34, %33 : vector<8x128xf32>
    %36 = arith.divf %34, %35 : vector<8x128xf32>
    %37 = math.tanh %31 : vector<8x128xf32>
    %38 = arith.subf %37, %0 : vector<8x128xf32>
    %39 = arith.mulf %36, %38 : vector<8x128xf32>
    %40 = arith.addf %0, %39 : vector<8x128xf32>
    %c0_22 = arith.constant 0 : index
    %c0_23 = arith.constant 0 : index
    %41 = vector.load %arg7[%c0_22, %c0_23] : memref<8x128xf32, #tpu.memory_space<vmem>>, vector<8x128xf32>
    tpu.vector_store %arg7[%c0_22, %c0_23], %40 {strides = array<i32>} : memref<8x128xf32, #tpu.memory_space<vmem>>, vector<8x128xf32>,
    return
  }
  func.func @transform_0(%arg0: i32) -> (i32, i32) {
    %c0_i32 = arith.constant 0 : i32
    %c0_i32_0 = arith.constant 0 : i32
    return %arg0, %c0_i32 : i32, i32
  }
  func.func @transform_1(%arg0: i32) -> (i32, i32) {
    %c0_i32 = arith.constant 0 : i32
    %c0_i32_0 = arith.constant 0 : i32
    return %arg0, %c0_i32 : i32, i32
  }
  func.func @transform_2(%arg0: i32) -> (i32, i32) {
    %c0_i32 = arith.constant 0 : i32
    %c0_i32_0 = arith.constant 0 : i32
    %c0_i32_1 = arith.constant 0 : i32
    return %c0_i32, %c0_i32_0 : i32, i32
  }
  func.func @transform_3(%arg0: i32) -> (i32, i32) {
    %c0_i32 = arith.constant 0 : i32
    %c0_i32_0 = arith.constant 0 : i32
    %c0_i32_1 = arith.constant 0 : i32
    return %c0_i32, %c0_i32_0 : i32, i32
  }
  func.func @transform_4(%arg0: i32) -> (i32, i32) {
    %c0_i32 = arith.constant 0 : i32
    %c0_i32_0 = arith.constant 0 : i32
    %c0_i32_1 = arith.constant 0 : i32
    return %c0_i32, %c0_i32_0 : i32, i32
  }
  func.func @transform_5(%arg0: i32) -> (i32, i32) {
    %c0_i32 = arith.constant 0 : i32
    %c0_i32_0 = arith.constant 0 : i32
    %c0_i32_1 = arith.constant 0 : i32
    return %c0_i32, %c0_i32_0 : i32, i32
  }
  func.func @transform_6(%arg0: i32) -> (i32, i32) {
    %c0_i32 = arith.constant 0 : i32
    %c0_i32_0 = arith.constant 0 : i32
    return %arg0, %c0_i32 : i32, i32
  }
}

</mosaic_0001>

<bundles_post_ra>
// kernel: tpu_custom_call.1
= control target key start
LH: loop header
LB: loop body
LE: loop exit
PB: predicated region body
PF: predicated region fallthrough
CT: control target
= control target key end

     0   :  { %11 = vsyncpa [#allocation3], 0  ;;  %s1285_s0 = inlined_call_operand.hbm [shape: f32[8,128], index: 0, kind: input, shape index: {}]   ;;  %s1286_s1 = inlined_call_operand.hbm [shape: f32[8,128], index: 1, kind: input, shape index: {}]   ;;  %s1287_s2 = inlined_call_operand.hbm [shape: bf16[128,384], index: 2, kind: input, shape index: {}]   ;;  %s1288_s3 = inlined_call_operand.hbm [shape: bf16[128,256], index: 3, kind: input, shape index: {}]   ;;  %s1289_s4 = inlined_call_operand.hbm [shape: bf16[128,128], index: 4, kind: input, shape index: {}]   ;;  %s1290_s5 = inlined_call_operand.vmem [shape: f32[1,384], index: 5, kind: input, shape index: {}]   ;;  %s1291_s6 = inlined_call_operand.hbm [shape: f32[8,128], index: 6, kind: output, shape index: {}]  }
   0x1   :  { %12 = vsyncpa [#allocation6], 0 }
   0x2   :  { %13 = vsyncpa [#allocation9], 0 }
   0x3   :  { %14 = vsyncpa [#allocation4], 0  ;;  %s1092_s21 = smov [#allocation5]   ;;  %s1093_s23 = smov [#allocation8]  }
   0x4   :  { %s31_s22 = sshll.u32 %s1092_s21, 4  ;;  %s52_s24 = sshll.u32 %s1093_s23, 4  ;;  %s32_s22 = int_to_ptr.vmem [resolvable:$true] %s31_s22  ;;  %s1142_s24 = int_to_ptr.vmem [resolvable:$true] %s52_s24 }
   0x5   :  { %s952_s27 = scalar_lea.hbm %s1286_s1, 128 }
   0x6   :  { %p953_p0 = scmp.ne.s32.totalorder %s1286_s1, %s952_s27  ;;  %p956_p1 = scmp.lt.u32.totalorder %s952_s27, %s1286_s1 }
   0x8   :  { %p958_p2 = pnand %p956_p1, %p953_p0 }
   0xa   :  { %961 = shalt.err (!%p958_p2)
}
   0xb   :  { %s962_s8 = scalar_lea.vmem %s32_s22, 128  ;;  %p967_p4 = scmp.lt.s32.totalorder %s32_s22, %s32_s22 }
   0xc   :  { %p963_p3 = scmp.ne.s32.totalorder %s32_s22, %s962_s8  ;;  %p968_p5 = scmp.lt.s32.totalorder %s962_s8, %s962_s8 }
   0xe   :  { %p969_p6 = por %p968_p5, %p967_p4 }
  0x10   :  { %p970_p7 = pnand %p969_p6, %p963_p3 }
  0x12   :  { %973 = shalt.err (!%p970_p7)
}
  0x13   :  { %34 = dma.hbm_to_vmem [thread:$0]  %s1286_s1, 128, %s32_s22, [#allocation6]  }
  0x14   :  { %s974_s13 = scalar_lea.hbm %s1288_s3, 2048 }
  0x15   :  { %p975_p8 = scmp.ne.s32.totalorder %s1288_s3, %s974_s13  ;;  %p978_p9 = scmp.lt.u32.totalorder %s974_s13, %s1288_s3 }
  0x17   :  { %p980_p10 = pnand %p978_p9, %p975_p8 }
  0x19   :  { %983 = shalt.err (!%p980_p10)
}
  0x1a   :  { %s984_s18 = scalar_lea.vmem %s1142_s24, 2048  ;;  %p989_p12 = scmp.lt.s32.totalorder %s1142_s24, %s1142_s24 }
  0x1b   :  { %p985_p11 = scmp.ne.s32.totalorder %s1142_s24, %s984_s18  ;;  %p990_p13 = scmp.lt.s32.totalorder %s984_s18, %s984_s18 }
  0x1d   :  { %p991_p0 = por %p990_p13, %p989_p12 }
  0x1f   :  { %p992_p1 = pnand %p991_p0, %p985_p11 }
  0x21   :  { %995 = shalt.err (!%p992_p1)
}
  0x22   :  { %s1094_s1 = smov 128   ;;  %s1095_s19 = smov 8  }
  0x23   :  { %58 = dma.hbm_to_vmem [thread:$0]  %s1288_s3, 2048, %s1142_s24, [#allocation9], %s1094_s1, %s1094_s1, %s1095_s19  }
  0x24   :  { %s1096_s22 = smov [#allocation2]   ;;  %s1097_s25 = smov [#allocation7]  }
  0x25   :  { %s21_s23 = sshll.u32 %s1096_s22, 4  ;;  %s40_s26 = sshll.u32 %s1097_s25, 4  ;;  %s22_s23 = int_to_ptr.vmem [resolvable:$true] %s21_s23  ;;  %s1173_s26 = int_to_ptr.vmem [resolvable:$true] %s40_s26 }
  0x26   :  { %s996_s29 = scalar_lea.hbm %s1285_s0, 128 }
  0x27   :  { %p997_p2 = scmp.ne.s32.totalorder %s1285_s0, %s996_s29  ;;  %p1000_p3 = scmp.lt.u32.totalorder %s996_s29, %s1285_s0 }
  0x29   :  { %p1002_p4 = pnand %p1000_p3, %p997_p2 }
  0x2b   :  { %1005 = shalt.err (!%p1002_p4)
}
  0x2c   :  { %s1006_s3 = scalar_lea.vmem %s22_s23, 128  ;;  %p1011_p6 = scmp.lt.s32.totalorder %s22_s23, %s22_s23 }
  0x2d   :  { %p1007_p5 = scmp.ne.s32.totalorder %s22_s23, %s1006_s3  ;;  %p1012_p7 = scmp.lt.s32.totalorder %s1006_s3, %s1006_s3 }
  0x2f   :  { %p1013_p8 = por %p1012_p7, %p1011_p6 }
  0x31   :  { %p1014_p9 = pnand %p1013_p8, %p1007_p5 }
  0x33   :  { %1017 = shalt.err (!%p1014_p9)
}
  0x34   :  { %24 = dma.hbm_to_vmem [thread:$0]  %s1285_s0, 128, %s22_s23, [#allocation3]  }
  0x35   :  { %s1018_s13 = scalar_lea.hbm %s1287_s2, 3072 }
  0x36   :  { %p1019_p10 = scmp.ne.s32.totalorder %s1287_s2, %s1018_s13  ;;  %p1022_p11 = scmp.lt.u32.totalorder %s1018_s13, %s1287_s2 }
  0x38   :  { %p1024_p12 = pnand %p1022_p11, %p1019_p10 }
  0x3a   :  { %1027 = shalt.err (!%p1024_p12)
}
  0x3b   :  { %s1028_s18 = scalar_lea.vmem %s1173_s26, 3072  ;;  %p1033_p0 = scmp.lt.s32.totalorder %s1173_s26, %s1173_s26 }
  0x3c   :  { %p1029_p13 = scmp.ne.s32.totalorder %s1173_s26, %s1028_s18  ;;  %p1034_p1 = scmp.lt.s32.totalorder %s1028_s18, %s1028_s18 }
  0x3e   :  { %p1035_p2 = por %p1034_p1, %p1033_p0 }
  0x40   :  { %p1036_p3 = pnand %p1035_p2, %p1029_p13 }
  0x42   :  { %1039 = shalt.err (!%p1036_p3)
}
  0x43   :  { %s1098_s0 = smov 192   ;;  %s1099_s1 = smov 12  }
  0x44   :  { %46 = dma.hbm_to_vmem [thread:$0]  %s1287_s2, 3072, %s1173_s26, [#allocation6], %s1098_s0, %s1098_s0, %s1099_s1  }
  0x45   :  { %s1100_s21 = smov [#allocation10]   ;;  %s1040_s27 = scalar_lea.hbm %s1289_s4, 1024 }
  0x46   :  { %s64_s22 = sshll.u32 %s1100_s21, 4  ;;  %p1041_p4 = scmp.ne.s32.totalorder %s1289_s4, %s1040_s27  ;;  %s65_s22 = int_to_ptr.vmem [resolvable:$true] %s64_s22 }
  0x47   :  { %p1044_p5 = scmp.lt.u32.totalorder %s1040_s27, %s1289_s4 }
  0x49   :  { %p1046_p6 = pnand %p1044_p5, %p1041_p4 }
  0x4b   :  { %1049 = shalt.err (!%p1046_p6)
}
  0x4c   :  { %s1050_s8 = scalar_lea.vmem %s65_s22, 1024  ;;  %p1055_p8 = scmp.lt.s32.totalorder %s65_s22, %s65_s22 }
  0x4d   :  { %p1051_p7 = scmp.ne.s32.totalorder %s65_s22, %s1050_s8  ;;  %p1056_p9 = scmp.lt.s32.totalorder %s1050_s8, %s1050_s8 }
  0x4f   :  { %p1057_p10 = por %p1056_p9, %p1055_p8 }
  0x51   :  { %p1058_p11 = pnand %p1057_p10, %p1051_p7 }
  0x53   :  { %1061 = shalt.err (!%p1058_p11)
}
  0x54   :  { %s1101_s2 = smov 64   ;;  %s1102_s26 = smov 4  }
  0x55   :  { %70 = dma.hbm_to_vmem [thread:$0]  %s1289_s4, 1024, %s65_s22, [#allocation9], %s1101_s2, %s1101_s2, %s1102_s26  }
  0x56   :  { %1084 = dma.done.wait [#allocation3], 128  }
  0x57   :  { %1085 = vsyncadd [#allocation3], 4294967168 }
  0x58   :  { %1086 = dma.done.wait [#allocation6], 3200  }
  0x59   :  { %1087 = vsyncadd [#allocation6], 4294964096 }
  0x5a   :  { %1088 = dma.done.wait [#allocation9], 3072  }
  0x5b   :  { %1089 = vsyncadd [#allocation9], 4294964224  ;;  %v1103_v0 = vmov 0.0   ;;  %vm1104_vm0 = vmmov 0   ;;  %v886_v1 = vld [vmem:[#allocation8] ss:$8 sps:$4 sm:$0xff]  }
  0x5c   :  { %791 = vmatprep.subr.bf16.mxu0 %v1103_v0  ;;  %811 = vmatprep.subr.bf16.mxu1 %v1103_v0  ;;  %v887_v2 = vld [vmem:[#allocation7] ss:$12 sps:$4 sm:$0xff]   ;;  %v888_v3 = vld [vmem:[#allocation8 + $0x10] ss:$8 sps:$4 sm:$0xff]   ;;  %v893_v8 = vld [vmem:[#allocation7 + $0x48] ss:$12 sps:$4 sm:$0xff]  }
  0x5d   :  { %807 = vmatprep.mubr.msk.bf16.mxu0 %vm1104_vm0, %v1103_v0  ;;  %827 = vmatprep.mubr.msk.bf16.mxu1 %vm1104_vm0, %v1103_v0  ;;  %v889_v4 = vld [vmem:[#allocation7 + $0x18] ss:$12 sps:$4 sm:$0xff]   ;;  %v890_v5 = vld [vmem:[#allocation8 + $0x20] ss:$8 sps:$4 sm:$0xff]   ;;  %v891_v6 = vld [vmem:[#allocation7 + $0x30] ss:$12 sps:$4 sm:$0xff]  }
  0x5e   :  { %792 = vmatpush3.bf16.msra.mxu0 %v886_v1  ;;  %812 = vmatpush3.bf16.msra.mxu1 %v887_v2  ;;  %v892_v7 = vld [vmem:[#allocation8 + $0x30] ss:$8 sps:$4 sm:$0xff]   ;;  %v894_v9 = vld [vmem:[#allocation8 + $0x40] ss:$8 sps:$4 sm:$0xff]   ;;  %v908_v24 = vld [vmem:[#allocation8 + $0x4] ss:$8 sps:$4 sm:$0xff]  }
  0x5f   :  { %793 = vmatprep.subr.bf16.mxu0 %v1103_v0  ;;  %813 = vmatprep.subr.bf16.mxu1 %v1103_v0  ;;  %v895_v10 = vld [vmem:[#allocation7 + $0x60] ss:$12 sps:$4 sm:$0xff]   ;;  %v896_v11 = vld [vmem:[#allocation8 + $0x50] ss:$8 sps:$4 sm:$0xff]   ;;  %v901_v16 = vld [vmem:[#allocation7 + $0xa8] ss:$12 sps:$4 sm:$0xff]  }
  0x60   :  { %v897_v12 = vld [vmem:[#allocation7 + $0x78] ss:$12 sps:$4 sm:$0xff]   ;;  %v898_v13 = vld [vmem:[#allocation8 + $0x60] ss:$8 sps:$4 sm:$0xff]   ;;  %v899_v14 = vld [vmem:[#allocation7 + $0x90] ss:$12 sps:$4 sm:$0xff]  }
  0x61   :  { %v900_v15 = vld [vmem:[#allocation8 + $0x70] ss:$8 sps:$4 sm:$0xff]   ;;  %v904_v19 = vld [vmem:[#allocation7 + $0x8] ss:$12 sps:$4 sm:$0xff]   ;;  %v907_v23 = vld [vmem:[#allocation7 + $0x20] ss:$12 sps:$4 sm:$0xff]  }
  0x62   :  { %794 = vmatpush3.bf16.msra.mxu0 %v888_v3  ;;  %814 = vmatpush3.bf16.msra.mxu1 %v889_v4  ;;  %v1234_v17 = vld [vmem:[#allocation5] sm:$0xff]  ;;  %v90_v18 = vld [vmem:[#allocation2] sm:$0xff]  ;;  %v916_v30 = vld [vmem:[#allocation8 + $0x24] ss:$8 sps:$4 sm:$0xff]   ;;  %v1105_v44 = vmov 0  }
  0x63   :  { %795 = vmatprep.subr.bf16.mxu0 %v1103_v0  ;;  %815 = vmatprep.subr.bf16.mxu1 %v1103_v0  ;;  %v1240_v20 = vpack.c.bf16 %v1234_v17, %v1234_v17  ;;  %v91_v21 = vpack.c.bf16 %v90_v18, %v90_v18  ;;  %v902_v22 = vld [vmem:[#allocation7 + $0x4] ss:$12 sps:$4 sm:$0xff]   ;;  %v905_v25 = vld [vmem:[#allocation7 + $0x1c] ss:$12 sps:$4 sm:$0xff]   ;;  %v909_v28 = vld [vmem:[#allocation7 + $0x34] ss:$12 sps:$4 sm:$0xff]  }
  0x64   :  { %v911_v26 = vld [vmem:[#allocation7 + $0x38] ss:$12 sps:$4 sm:$0xff]   ;;  %v912_v27 = vld [vmem:[#allocation8 + $0x14] ss:$8 sps:$4 sm:$0xff]   ;;  %v923_v35 = vld [vmem:[#allocation7 + $0x80] ss:$12 sps:$4 sm:$0xff]  }
  0x65   :  { %v915_v29 = vld [vmem:[#allocation7 + $0x50] ss:$12 sps:$4 sm:$0xff]   ;;  %v913_v31 = vld [vmem:[#allocation7 + $0x4c] ss:$12 sps:$4 sm:$0xff]   ;;  %v919_v32 = vld [vmem:[#allocation7 + $0x68] ss:$12 sps:$4 sm:$0xff]  }
  0x66   :  { %796 = vmatpush3.bf16.msra.mxu0 %v890_v5  ;;  %816 = vmatpush3.bf16.msra.mxu1 %v891_v6  ;;  %v920_v33 = vld [vmem:[#allocation8 + $0x34] ss:$8 sps:$4 sm:$0xff]   ;;  %v917_v34 = vld [vmem:[#allocation7 + $0x64] ss:$12 sps:$4 sm:$0xff]   ;;  %v929_v43 = vld [vmem:[#allocation7 + $0xac] ss:$12 sps:$4 sm:$0xff]  }
  0x67   :  { %797 = vmatprep.subr.bf16.mxu0 %v1103_v0  ;;  %817 = vmatprep.subr.bf16.mxu1 %v1103_v0  ;;  %v924_v36 = vld [vmem:[#allocation8 + $0x44] ss:$8 sps:$4 sm:$0xff]   ;;  %v921_v37 = vld [vmem:[#allocation7 + $0x7c] ss:$12 sps:$4 sm:$0xff]   ;;  %v925_v40 = vld [vmem:[#allocation7 + $0x94] ss:$12 sps:$4 sm:$0xff]  }
  0x68   :  { %v927_v38 = vld [vmem:[#allocation7 + $0x98] ss:$12 sps:$4 sm:$0xff]   ;;  %v928_v39 = vld [vmem:[#allocation8 + $0x54] ss:$8 sps:$4 sm:$0xff]   ;;  %v935_v47 = vld [vmem:[#allocation10 + $0x8] sm:$0xff]  }
  0x69   :  { %v931_v41 = vld [vmem:[#allocation7 + $0xb0] ss:$12 sps:$4 sm:$0xff]   ;;  %v932_v42 = vld [vmem:[#allocation8 + $0x64] ss:$8 sps:$4 sm:$0xff]  }
  0x6a   :  { %798 = vmatpush3.bf16.msra.mxu0 %v892_v7  ;;  %818 = vmatpush3.bf16.msra.mxu1 %v893_v8  ;;  %v933_v45 = vld [vmem:[#allocation8 + $0x74] ss:$8 sps:$4 sm:$0xff]   ;;  %v934_v46 = vld [vmem:[#allocation10] sm:$0xff]   ;;  %v939_v51 = vld [vmem:[#allocation10 + $0x28] sm:$0xff]   ;;  %v335_v7 = vlaneseq }
  0x6b   :  { %799 = vmatprep.subr.bf16.mxu0 %v1103_v0  ;;  %819 = vmatprep.subr.bf16.mxu1 %v1103_v0  ;;  %v936_v48 = vld [vmem:[#allocation10 + $0x10] sm:$0xff]   ;;  %v937_v49 = vld [vmem:[#allocation10 + $0x18] sm:$0xff]   ;;  %v938_v50 = vld [vmem:[#allocation10 + $0x20] sm:$0xff]  }
  0x6c   :  { %v940_v52 = vld [vmem:[#allocation10 + $0x30] sm:$0xff]   ;;  %v941_v53 = vld [vmem:[#allocation10 + $0x38] sm:$0xff]   ;;  %v336_v8 = vshrl.u32 %v335_v7, 7 }
  0x6d   :  { %v720_v56 = vld [vmem:[%s1290_s5] ss:$0 sm:$0xff] }
  0x6e   :  { %800 = vmatpush3.bf16.msra.mxu0 %v894_v9  ;;  %820 = vmatpush3.bf16.msra.mxu1 %v895_v10  ;;  %v337_v9 = vsub.s32 0, %v336_v8  ;;  %v333_v10 = vld [vmem:[%s1290_s5 + $0x1] sm:$0x3]  ;;  %s1106_s5 = smov [#allocation11]  }
  0x6f   :  { %801 = vmatprep.subr.bf16.mxu0 %v1103_v0  ;;  %821 = vmatprep.subr.bf16.mxu1 %v1103_v0  ;;  %s693_s12 = sshll.u32 %s1106_s5, 4  ;;  %s694_s12 = int_to_ptr.vmem [resolvable:$true] %s693_s12 }
  0x70   :  { %s1062_s13 = scalar_lea.vmem %s694_s12, 128  ;;  %p1067_p13 = scmp.lt.s32.totalorder %s694_s12, %s694_s12 }
  0x71   :  { %p1063_p12 = scmp.ne.s32.totalorder %s694_s12, %s1062_s13  ;;  %p1068_p0 = scmp.lt.s32.totalorder %s1062_s13, %s1062_s13 }
  0x72   :  { %802 = vmatpush3.bf16.msra.mxu0 %v896_v11  ;;  %822 = vmatpush3.bf16.msra.mxu1 %v897_v12  ;;  %v338_v11 = vrot.slane %v333_v10, %v337_v9 }
  0x73   :  { %803 = vmatprep.subr.bf16.mxu0 %v1103_v0  ;;  %823 = vmatprep.subr.bf16.mxu1 %v1103_v0  ;;  %p1069_p1 = por %p1068_p0, %p1067_p13 }
  0x75   :  { %p1070_p2 = pnand %p1069_p1, %p1063_p12 }
  0x76   :  { %804 = vmatpush3.bf16.msra.mxu0 %v898_v13  ;;  %824 = vmatpush3.bf16.msra.mxu1 %v899_v14 }
  0x77   :  { %805 = vmatprep.subr.bf16.mxu0 %v1103_v0  ;;  %825 = vmatprep.subr.bf16.mxu1 %v1103_v0 }
  0x7a   :  { %806 = vmatpush3.bf16.msra.mxu0 %v900_v15  ;;  %826 = vmatpush3.bf16.msra.mxu1 %v901_v16 }
  0x7b   :  { %425 = vmatprep.subr.bf16.mxu0 %v904_v19  ;;  %831 = vmatprep.subr.bf16.mxu1 %v1103_v0 }
  0x7d   :  { %808 = vmatmul.mubr.bf16.vlgmr.msra.gmra.mrb[0].mxu0 %v1240_v20  ;;  %828 = vmatmul.mubr.bf16.vlgmr.msra.gmra.mrb[0].mxu1 %v91_v21 }
  0x7e   :  { %426 = vmatpush1.bf16.msra.mxu0 %v902_v22  ;;  %832 = vmatpush3.bf16.msra.mxu1 %v908_v24  ;;  %v341_v24 = vsub.s32 1, %v336_v8 }
  0x7f   :  { %427 = vmatprep.subr.bf16.mxu0 %v907_v23  ;;  %833 = vmatprep.subr.bf16.mxu1 %v1103_v0 }
  0x80   :  { %847 = vmatprep.mubr.msk.bf16.mxu1 %vm1104_vm0, %v1103_v0  ;;  %457 = vmatprep.mubr.bf16.mxu0 %v1105_v44 }
  0x82   :  { %428 = vmatpush1.bf16.msra.mxu0 %v905_v25  ;;  %834 = vmatpush3.bf16.msra.mxu1 %v912_v27  ;;  %v342_v25 = vrot.slane %v333_v10, %v341_v24 }
  0x83   :  { %429 = vmatprep.subr.bf16.mxu0 %v911_v26  ;;  %835 = vmatprep.subr.bf16.mxu1 %v1103_v0 }
  0x86   :  { %430 = vmatpush1.bf16.msra.mxu0 %v909_v28  ;;  %836 = vmatpush3.bf16.msra.mxu1 %v916_v30 }
  0x87   :  { %431 = vmatprep.subr.bf16.mxu0 %v915_v29  ;;  %837 = vmatprep.subr.bf16.mxu1 %v1103_v0 }
  0x8a   :  { %432 = vmatpush1.bf16.msra.mxu0 %v913_v31  ;;  %838 = vmatpush3.bf16.msra.mxu1 %v920_v33 }
  0x8b   :  { %433 = vmatprep.subr.bf16.mxu0 %v919_v32  ;;  %839 = vmatprep.subr.bf16.mxu1 %v1103_v0 }
  0x8e   :  { %434 = vmatpush1.bf16.msra.mxu0 %v917_v34  ;;  %840 = vmatpush3.bf16.msra.mxu1 %v924_v36 }
  0x8f   :  { %435 = vmatprep.subr.bf16.mxu0 %v923_v35  ;;  %841 = vmatprep.subr.bf16.mxu1 %v1103_v0 }
  0x92   :  { %436 = vmatpush1.bf16.msra.mxu0 %v921_v37  ;;  %842 = vmatpush3.bf16.msra.mxu1 %v928_v39 }
  0x93   :  { %437 = vmatprep.subr.bf16.mxu0 %v927_v38  ;;  %843 = vmatprep.subr.bf16.mxu1 %v1103_v0 }
  0x96   :  { %438 = vmatpush1.bf16.msra.mxu0 %v925_v40  ;;  %844 = vmatpush3.bf16.msra.mxu1 %v932_v42 }
  0x97   :  { %439 = vmatprep.subr.bf16.mxu0 %v931_v41  ;;  %845 = vmatprep.subr.bf16.mxu1 %v1103_v0 }
  0x9a   :  { %440 = vmatpush1.bf16.msra.mxu0 %v929_v43  ;;  %846 = vmatpush3.bf16.msra.mxu1 %v933_v45 }
  0x9b   :  { %851 = vmatprep.subr.bf16.mxu0 %v1103_v0 }
  0x9d   :  { %458 = vmatmul.mubr.bf16.vlgmr.msra.gmra.mrb[4].mxu0 %v91_v21  ;;  %848 = vmatmul.mubr.bf16.vlgmr.msra.gmra.mrb[4].mxu1 %v1240_v20 }
  0x9e   :  { %867 = vmatprep.mubr.msk.bf16.mxu0 %vm1104_vm0, %v1103_v0  ;;  %852 = vmatpush3.bf16.msra.mxu0 %v934_v46 }
  0x9f   :  { %853 = vmatprep.subr.bf16.mxu0 %v1103_v0 }
  0xa2   :  { %854 = vmatpush3.bf16.msra.mxu0 %v935_v47 }
  0xa3   :  { %855 = vmatprep.subr.bf16.mxu0 %v1103_v0 }
  0xa6   :  { %856 = vmatpush3.bf16.msra.mxu0 %v936_v48 }
  0xa7   :  { %857 = vmatprep.subr.bf16.mxu0 %v1103_v0 }
  0xaa   :  { %858 = vmatpush3.bf16.msra.mxu0 %v937_v49 }
  0xab   :  { %859 = vmatprep.subr.bf16.mxu0 %v1103_v0 }
  0xae   :  { %860 = vmatpush3.bf16.msra.mxu0 %v938_v50 }
  0xaf   :  { %861 = vmatprep.subr.bf16.mxu0 %v1103_v0 }
  0xb2   :  { %862 = vmatpush3.bf16.msra.mxu0 %v939_v51 }
  0xb3   :  { %863 = vmatprep.subr.bf16.mxu0 %v1103_v0 }
  0xb6   :  { %864 = vmatpush3.bf16.msra.mxu0 %v940_v52 }
  0xb7   :  { %865 = vmatprep.subr.bf16.mxu0 %v1103_v0 }
  0xba   :  { %866 = vmatpush3.bf16.msra.mxu0 %v941_v53 }
 0x150   :  { %v207_v54 = vpop.f32.mrb[0].mxu0  ;;  %v295_v55 = vpop.f32.mrb[0].mxu1 }
 0x151   :  { %v809_v57 = vpop.f32.mrb[1].mxu0  ;;  %v296_v58 = vadd.f32 %v295_v55, %v207_v54  ;;  %v829_v59 = vpop.f32.mrb[1].mxu1 }
 0x152   :  { %v210_v60 = vpop.f32.mrb[2].mxu0  ;;  %v298_v61 = vpop.f32.mrb[2].mxu1 }
 0x153   :  { %v810_v62 = vpop.f32.mrb[3].mxu0  ;;  %v308_v63 = vadd.f32 %v720_v56, %v296_v58  ;;  %v830_v1 = vpop.f32.mrb[3].mxu1 }
 0x155   :  { %v721_v2 = vmul.f32 -1.442695, %v308_v63 }
 0x157   :  { %942 = vpow2.f32 %v721_v2 }
 0x161   :  { %v943_v3 = vpop.eup %942 }
 0x162   :  { %v312_v4 = vadd.f32 1.0, %v943_v3 }
 0x164   :  { %944 = vrcp.f32 %v312_v4 }
 0x16e   :  { %v945_v0 = vpop.eup %944 }
 0x16f   :  { %v315_v5 = vmul.f32 %v945_v0, %v1234_v17 }
 0x170   :  { %v459_v12 = vpop.f32.mrb[4].mxu0  ;;  %v564_v18 = vpop.f32.mrb[4].mxu1 }
 0x171   :  { %v316_v6 = vpack.c.bf16 %v315_v5, %v315_v5  ;;  %v461_v13 = vpop.f32.mrb[5].mxu0  ;;  %v460_v14 = vadd.f32 %v459_v12, %v338_v11  ;;  %v849_v20 = vpop.f32.mrb[5].mxu1 }
 0x172   :  { %v463_v15 = vpop.f32.mrb[6].mxu0  ;;  %v567_v21 = vpop.f32.mrb[6].mxu1  ;;  %v462_v27 = vadd.f32 %v461_v13, %v342_v25 }
 0x173   :  { %868 = vmatmul.mubr.bf16.vlgmr.msra.gmra.mrb[8].mxu0 %v316_v6  ;;  %v464_v16 = vpop.f32.mrb[7].mxu0  ;;  %v570_v19 = vadd.f32 %v564_v18, %v460_v14  ;;  %v850_v22 = vpop.f32.mrb[7].mxu1 }
 0x175   :  { %v754_v23 = vmul.f32 -1.442695, %v570_v19 }
 0x177   :  { %946 = vpow2.f32 %v754_v23 }
 0x181   :  { %v947_v26 = vpop.eup %946 }
 0x182   :  { %v679_v29 = vadd.f32 1.0, %v947_v26 }
 0x246   :  { %v669_v28 = vpop.f32.mrb[8].mxu0 }
 0x247   :  { %v675_v30 = vadd.f32 %v669_v28, %v462_v27  ;;  %v869_v31 = vpop.f32.mrb[9].mxu0 }
 0x248   :  { %v672_v32 = vpop.f32.mrb[10].mxu0 }
 0x249   :  { %948 = vtanh.f32 %v675_v30  ;;  %v870_v33 = vpop.f32.mrb[11].mxu0 }
 0x24a   :  { %950 = vrcp.f32 %v679_v29 }
 0x253   :  { %v949_v34 = vpop.eup %948 }
 0x254   :  { %v683_v35 = vsub.f32 %v949_v34, %v1234_v17  ;;  %v951_v36 = vpop.eup %950 }
 0x256   :  { %v684_v37 = vmul.f32 %v951_v36, %v683_v35 }
 0x258   :  { %v685_v38 = vadd.f32 %v684_v37, %v1234_v17 }
 0x25a   :  { %686 = vst [vmem:[#allocation11] sm:$0xff] %v685_v38 }
 0x25b   :  { %1073 = shalt.err (!%p1070_p2)
}
 0x25c   :  { %s1074_s16 = scalar_lea.hbm %s1291_s6, 128 }
 0x25d   :  { %p1075_p3 = scmp.ne.s32.totalorder %s1291_s6, %s1074_s16  ;;  %p1078_p4 = scmp.lt.u32.totalorder %s1074_s16, %s1291_s6 }
 0x25f   :  { %p1080_p5 = pnand %p1078_p4, %p1075_p3 }
 0x261   :  { %1083 = shalt.err (!%p1080_p5)
}
 0x262   :  { %696 = dma.vmem_to_hbm [thread:$0]  %s694_s12, 128, %s1291_s6, [#allocation4]  }
 0x263   :  { %1090 = dma.done.wait [#allocation4], 128  }
 0x264   :  { %1091 = vsyncadd [#allocation4], 4294967168 }
 0x265   :  { %700 = vsyncpa [#allocation3], 1 }
 0x266   :  { %701 = vsyncpa [#allocation6], 1 }
 0x267   :  { %702 = vsyncpa [#allocation9], 1 }
 0x268   :  { %703 = vsyncpa [#allocation4], 1 }

// kernel: tpu_custom_call.1
= control target key start
LH: loop header
LB: loop body
LE: loop exit
PB: predicated region body
PF: predicated region fallthrough
CT: control target
= control target key end

     0   :  { %11 = vsyncpa [#allocation3], 0  ;;  %s1285_s0 = inlined_call_operand.hbm [shape: f32[8,128], index: 0, kind: input, shape index: {}]   ;;  %s1286_s1 = inlined_call_operand.hbm [shape: f32[8,128], index: 1, kind: input, shape index: {}]   ;;  %s1287_s2 = inlined_call_operand.hbm [shape: bf16[128,384], index: 2, kind: input, shape index: {}]   ;;  %s1288_s3 = inlined_call_operand.hbm [shape: bf16[128,256], index: 3, kind: input, shape index: {}]   ;;  %s1289_s4 = inlined_call_operand.hbm [shape: bf16[128,128], index: 4, kind: input, shape index: {}]   ;;  %s1290_s5 = inlined_call_operand.vmem [shape: f32[1,384], index: 5, kind: input, shape index: {}]   ;;  %s1291_s6 = inlined_call_operand.hbm [shape: f32[8,128], index: 6, kind: output, shape index: {}]  }
   0x1   :  { %12 = vsyncpa [#allocation6], 0 }
   0x2   :  { %13 = vsyncpa [#allocation9], 0 }
   0x3   :  { %14 = vsyncpa [#allocation4], 0  ;;  %s1092_s21 = smov [#allocation5]   ;;  %s1093_s23 = smov [#allocation8]  }
   0x4   :  { %s31_s22 = sshll.u32 %s1092_s21, 4  ;;  %s52_s24 = sshll.u32 %s1093_s23, 4  ;;  %s32_s22 = int_to_ptr.vmem [resolvable:$true] %s31_s22  ;;  %s1142_s24 = int_to_ptr.vmem [resolvable:$true] %s52_s24 }
   0x5   :  { %s952_s27 = scalar_lea.hbm %s1286_s1, 128 }
   0x6   :  { %p953_p0 = scmp.ne.s32.totalorder %s1286_s1, %s952_s27  ;;  %p956_p1 = scmp.lt.u32.totalorder %s952_s27, %s1286_s1 }
   0x8   :  { %p958_p2 = pnand %p956_p1, %p953_p0 }
   0xa   :  { %961 = shalt.err (!%p958_p2)
}
   0xb   :  { %s962_s8 = scalar_lea.vmem %s32_s22, 128  ;;  %p967_p4 = scmp.lt.s32.totalorder %s32_s22, %s32_s22 }
   0xc   :  { %p963_p3 = scmp.ne.s32.totalorder %s32_s22, %s962_s8  ;;  %p968_p5 = scmp.lt.s32.totalorder %s962_s8, %s962_s8 }
   0xe   :  { %p969_p6 = por %p968_p5, %p967_p4 }
  0x10   :  { %p970_p7 = pnand %p969_p6, %p963_p3 }
  0x12   :  { %973 = shalt.err (!%p970_p7)
}
  0x13   :  { %34 = dma.hbm_to_vmem [thread:$0]  %s1286_s1, 128, %s32_s22, [#allocation6]  }
  0x14   :  { %s974_s13 = scalar_lea.hbm %s1288_s3, 2048 }
  0x15   :  { %p975_p8 = scmp.ne.s32.totalorder %s1288_s3, %s974_s13  ;;  %p978_p9 = scmp.lt.u32.totalorder %s974_s13, %s1288_s3 }
  0x17   :  { %p980_p10 = pnand %p978_p9, %p975_p8 }
  0x19   :  { %983 = shalt.err (!%p980_p10)
}
  0x1a   :  { %s984_s18 = scalar_lea.vmem %s1142_s24, 2048  ;;  %p989_p12 = scmp.lt.s32.totalorder %s1142_s24, %s1142_s24 }
  0x1b   :  { %p985_p11 = scmp.ne.s32.totalorder %s1142_s24, %s984_s18  ;;  %p990_p13 = scmp.lt.s32.totalorder %s984_s18, %s984_s18 }
  0x1d   :  { %p991_p0 = por %p990_p13, %p989_p12 }
  0x1f   :  { %p992_p1 = pnand %p991_p0, %p985_p11 }
  0x21   :  { %995 = shalt.err (!%p992_p1)
}
  0x22   :  { %s1094_s1 = smov 128   ;;  %s1095_s19 = smov 8  }
  0x23   :  { %58 = dma.hbm_to_vmem [thread:$0]  %s1288_s3, 2048, %s1142_s24, [#allocation9], %s1094_s1, %s1094_s1, %s1095_s19  }
  0x24   :  { %s1096_s22 = smov [#allocation2]   ;;  %s1097_s25 = smov [#allocation7]  }
  0x25   :  { %s21_s23 = sshll.u32 %s1096_s22, 4  ;;  %s40_s26 = sshll.u32 %s1097_s25, 4  ;;  %s22_s23 = int_to_ptr.vmem [resolvable:$true] %s21_s23  ;;  %s1173_s26 = int_to_ptr.vmem [resolvable:$true] %s40_s26 }
  0x26   :  { %s996_s29 = scalar_lea.hbm %s1285_s0, 128 }
  0x27   :  { %p997_p2 = scmp.ne.s32.totalorder %s1285_s0, %s996_s29  ;;  %p1000_p3 = scmp.lt.u32.totalorder %s996_s29, %s1285_s0 }
  0x29   :  { %p1002_p4 = pnand %p1000_p3, %p997_p2 }
  0x2b   :  { %1005 = shalt.err (!%p1002_p4)
}
  0x2c   :  { %s1006_s3 = scalar_lea.vmem %s22_s23, 128  ;;  %p1011_p6 = scmp.lt.s32.totalorder %s22_s23, %s22_s23 }
  0x2d   :  { %p1007_p5 = scmp.ne.s32.totalorder %s22_s23, %s1006_s3  ;;  %p1012_p7 = scmp.lt.s32.totalorder %s1006_s3, %s1006_s3 }
  0x2f   :  { %p1013_p8 = por %p1012_p7, %p1011_p6 }
  0x31   :  { %p1014_p9 = pnand %p1013_p8, %p1007_p5 }
  0x33   :  { %1017 = shalt.err (!%p1014_p9)
}
  0x34   :  { %24 = dma.hbm_to_vmem [thread:$0]  %s1285_s0, 128, %s22_s23, [#allocation3]  }
  0x35   :  { %s1018_s13 = scalar_lea.hbm %s1287_s2, 3072 }
  0x36   :  { %p1019_p10 = scmp.ne.s32.totalorder %s1287_s2, %s1018_s13  ;;  %p1022_p11 = scmp.lt.u32.totalorder %s1018_s13, %s1287_s2 }
  0x38   :  { %p1024_p12 = pnand %p1022_p11, %p1019_p10 }
  0x3a   :  { %1027 = shalt.err (!%p1024_p12)
}
  0x3b   :  { %s1028_s18 = scalar_lea.vmem %s1173_s26, 3072  ;;  %p1033_p0 = scmp.lt.s32.totalorder %s1173_s26, %s1173_s26 }
  0x3c   :  { %p1029_p13 = scmp.ne.s32.totalorder %s1173_s26, %s1028_s18  ;;  %p1034_p1 = scmp.lt.s32.totalorder %s1028_s18, %s1028_s18 }
  0x3e   :  { %p1035_p2 = por %p1034_p1, %p1033_p0 }
  0x40   :  { %p1036_p3 = pnand %p1035_p2, %p1029_p13 }
  0x42   :  { %1039 = shalt.err (!%p1036_p3)
}
  0x43   :  { %s1098_s0 = smov 192   ;;  %s1099_s1 = smov 12  }
  0x44   :  { %46 = dma.hbm_to_vmem [thread:$0]  %s1287_s2, 3072, %s1173_s26, [#allocation6], %s1098_s0, %s1098_s0, %s1099_s1  }
  0x45   :  { %s1100_s21 = smov [#allocation10]   ;;  %s1040_s27 = scalar_lea.hbm %s1289_s4, 1024 }
  0x46   :  { %s64_s22 = sshll.u32 %s1100_s21, 4  ;;  %p1041_p4 = scmp.ne.s32.totalorder %s1289_s4, %s1040_s27  ;;  %s65_s22 = int_to_ptr.vmem [resolvable:$true] %s64_s22 }
  0x47   :  { %p1044_p5 = scmp.lt.u32.totalorder %s1040_s27, %s1289_s4 }
  0x49   :  { %p1046_p6 = pnand %p1044_p5, %p1041_p4 }
  0x4b   :  { %1049 = shalt.err (!%p1046_p6)
}
  0x4c   :  { %s1050_s8 = scalar_lea.vmem %s65_s22, 1024  ;;  %p1055_p8 = scmp.lt.s32.totalorder %s65_s22, %s65_s22 }
  0x4d   :  { %p1051_p7 = scmp.ne.s32.totalorder %s65_s22, %s1050_s8  ;;  %p1056_p9 = scmp.lt.s32.totalorder %s1050_s8, %s1050_s8 }
  0x4f   :  { %p1057_p10 = por %p1056_p9, %p1055_p8 }
  0x51   :  { %p1058_p11 = pnand %p1057_p10, %p1051_p7 }
  0x53   :  { %1061 = shalt.err (!%p1058_p11)
}
  0x54   :  { %s1101_s2 = smov 64   ;;  %s1102_s26 = smov 4  }
  0x55   :  { %70 = dma.hbm_to_vmem [thread:$0]  %s1289_s4, 1024, %s65_s22, [#allocation9], %s1101_s2, %s1101_s2, %s1102_s26  }
  0x56   :  { %1084 = dma.done.wait [#allocation3], 128  }
  0x57   :  { %1085 = vsyncadd [#allocation3], 4294967168 }
  0x58   :  { %1086 = dma.done.wait [#allocation6], 3200  }
  0x59   :  { %1087 = vsyncadd [#allocation6], 4294964096 }
  0x5a   :  { %1088 = dma.done.wait [#allocation9], 3072  }
  0x5b   :  { %1089 = vsyncadd [#allocation9], 4294964224  ;;  %v1103_v0 = vmov 0.0   ;;  %vm1104_vm0 = vmmov 0   ;;  %v886_v1 = vld [vmem:[#allocation8] ss:$8 sps:$4 sm:$0xff]  }
  0x5c   :  { %791 = vmatprep.subr.bf16.mxu0 %v1103_v0  ;;  %811 = vmatprep.subr.bf16.mxu1 %v1103_v0  ;;  %v887_v2 = vld [vmem:[#allocation7] ss:$12 sps:$4 sm:$0xff]   ;;  %v888_v3 = vld [vmem:[#allocation8 + $0x10] ss:$8 sps:$4 sm:$0xff]   ;;  %v893_v8 = vld [vmem:[#allocation7 + $0x48] ss:$12 sps:$4 sm:$0xff]  }
  0x5d   :  { %807 = vmatprep.mubr.msk.bf16.mxu0 %vm1104_vm0, %v1103_v0  ;;  %827 = vmatprep.mubr.msk.bf16.mxu1 %vm1104_vm0, %v1103_v0  ;;  %v889_v4 = vld [vmem:[#allocation7 + $0x18] ss:$12 sps:$4 sm:$0xff]   ;;  %v890_v5 = vld [vmem:[#allocation8 + $0x20] ss:$8 sps:$4 sm:$0xff]   ;;  %v891_v6 = vld [vmem:[#allocation7 + $0x30] ss:$12 sps:$4 sm:$0xff]  }
  0x5e   :  { %792 = vmatpush3.bf16.msra.mxu0 %v886_v1  ;;  %812 = vmatpush3.bf16.msra.mxu1 %v887_v2  ;;  %v892_v7 = vld [vmem:[#allocation8 + $0x30] ss:$8 sps:$4 sm:$0xff]   ;;  %v894_v9 = vld [vmem:[#allocation8 + $0x40] ss:$8 sps:$4 sm:$0xff]   ;;  %v908_v24 = vld [vmem:[#allocation8 + $0x4] ss:$8 sps:$4 sm:$0xff]  }
  0x5f   :  { %793 = vmatprep.subr.bf16.mxu0 %v1103_v0  ;;  %813 = vmatprep.subr.bf16.mxu1 %v1103_v0  ;;  %v895_v10 = vld [vmem:[#allocation7 + $0x60] ss:$12 sps:$4 sm:$0xff]   ;;  %v896_v11 = vld [vmem:[#allocation8 + $0x50] ss:$8 sps:$4 sm:$0xff]   ;;  %v901_v16 = vld [vmem:[#allocation7 + $0xa8] ss:$12 sps:$4 sm:$0xff]  }
  0x60   :  { %v897_v12 = vld [vmem:[#allocation7 + $0x78] ss:$12 sps:$4 sm:$0xff]   ;;  %v898_v13 = vld [vmem:[#allocation8 + $0x60] ss:$8 sps:$4 sm:$0xff]   ;;  %v899_v14 = vld [vmem:[#allocation7 + $0x90] ss:$12 sps:$4 sm:$0xff]  }
  0x61   :  { %v900_v15 = vld [vmem:[#allocation8 + $0x70] ss:$8 sps:$4 sm:$0xff]   ;;  %v904_v19 = vld [vmem:[#allocation7 + $0x8] ss:$12 sps:$4 sm:$0xff]   ;;  %v907_v23 = vld [vmem:[#allocation7 + $0x20] ss:$12 sps:$4 sm:$0xff]  }
  0x62   :  { %794 = vmatpush3.bf16.msra.mxu0 %v888_v3  ;;  %814 = vmatpush3.bf16.msra.mxu1 %v889_v4  ;;  %v1234_v17 = vld [vmem:[#allocation5] sm:$0xff]  ;;  %v90_v18 = vld [vmem:[#allocation2] sm:$0xff]  ;;  %v916_v30 = vld [vmem:[#allocation8 + $0x24] ss:$8 sps:$4 sm:$0xff]   ;;  %v1105_v44 = vmov 0  }
  0x63   :  { %795 = vmatprep.subr.bf16.mxu0 %v1103_v0  ;;  %815 = vmatprep.subr.bf16.mxu1 %v1103_v0  ;;  %v1240_v20 = vpack.c.bf16 %v1234_v17, %v1234_v17  ;;  %v91_v21 = vpack.c.bf16 %v90_v18, %v90_v18  ;;  %v902_v22 = vld [vmem:[#allocation7 + $0x4] ss:$12 sps:$4 sm:$0xff]   ;;  %v905_v25 = vld [vmem:[#allocation7 + $0x1c] ss:$12 sps:$4 sm:$0xff]   ;;  %v909_v28 = vld [vmem:[#allocation7 + $0x34] ss:$12 sps:$4 sm:$0xff]  }
  0x64   :  { %v911_v26 = vld [vmem:[#allocation7 + $0x38] ss:$12 sps:$4 sm:$0xff]   ;;  %v912_v27 = vld [vmem:[#allocation8 + $0x14] ss:$8 sps:$4 sm:$0xff]   ;;  %v923_v35 = vld [vmem:[#allocation7 + $0x80] ss:$12 sps:$4 sm:$0xff]  }
  0x65   :  { %v915_v29 = vld [vmem:[#allocation7 + $0x50] ss:$12 sps:$4 sm:$0xff]   ;;  %v913_v31 = vld [vmem:[#allocation7 + $0x4c] ss:$12 sps:$4 sm:$0xff]   ;;  %v919_v32 = vld [vmem:[#allocation7 + $0x68] ss:$12 sps:$4 sm:$0xff]  }
  0x66   :  { %796 = vmatpush3.bf16.msra.mxu0 %v890_v5  ;;  %816 = vmatpush3.bf16.msra.mxu1 %v891_v6  ;;  %v920_v33 = vld [vmem:[#allocation8 + $0x34] ss:$8 sps:$4 sm:$0xff]   ;;  %v917_v34 = vld [vmem:[#allocation7 + $0x64] ss:$12 sps:$4 sm:$0xff]   ;;  %v929_v43 = vld [vmem:[#allocation7 + $0xac] ss:$12 sps:$4 sm:$0xff]  }
  0x67   :  { %797 = vmatprep.subr.bf16.mxu0 %v1103_v0  ;;  %817 = vmatprep.subr.bf16.mxu1 %v1103_v0  ;;  %v924_v36 = vld [vmem:[#allocation8 + $0x44] ss:$8 sps:$4 sm:$0xff]   ;;  %v921_v37 = vld [vmem:[#allocation7 + $0x7c] ss:$12 sps:$4 sm:$0xff]   ;;  %v925_v40 = vld [vmem:[#allocation7 + $0x94] ss:$12 sps:$4 sm:$0xff]  }
  0x68   :  { %v927_v38 = vld [vmem:[#allocation7 + $0x98] ss:$12 sps:$4 sm:$0xff]   ;;  %v928_v39 = vld [vmem:[#allocation8 + $0x54] ss:$8 sps:$4 sm:$0xff]   ;;  %v935_v47 = vld [vmem:[#allocation10 + $0x8] sm:$0xff]  }
  0x69   :  { %v931_v41 = vld [vmem:[#allocation7 + $0xb0] ss:$12 sps:$4 sm:$0xff]   ;;  %v932_v42 = vld [vmem:[#allocation8 + $0x64] ss:$8 sps:$4 sm:$0xff]  }
  0x6a   :  { %798 = vmatpush3.bf16.msra.mxu0 %v892_v7  ;;  %818 = vmatpush3.bf16.msra.mxu1 %v893_v8  ;;  %v933_v45 = vld [vmem:[#allocation8 + $0x74] ss:$8 sps:$4 sm:$0xff]   ;;  %v934_v46 = vld [vmem:[#allocation10] sm:$0xff]   ;;  %v939_v51 = vld [vmem:[#allocation10 + $0x28] sm:$0xff]   ;;  %v335_v7 = vlaneseq }
  0x6b   :  { %799 = vmatprep.subr.bf16.mxu0 %v1103_v0  ;;  %819 = vmatprep.subr.bf16.mxu1 %v1103_v0  ;;  %v936_v48 = vld [vmem:[#allocation10 + $0x10] sm:$0xff]   ;;  %v937_v49 = vld [vmem:[#allocation10 + $0x18] sm:$0xff]   ;;  %v938_v50 = vld [vmem:[#allocation10 + $0x20] sm:$0xff]  }
  0x6c   :  { %v940_v52 = vld [vmem:[#allocation10 + $0x30] sm:$0xff]   ;;  %v941_v53 = vld [vmem:[#allocation10 + $0x38] sm:$0xff]   ;;  %v336_v8 = vshrl.u32 %v335_v7, 7 }
  0x6d   :  { %v720_v56 = vld [vmem:[%s1290_s5] ss:$0 sm:$0xff] }
  0x6e   :  { %800 = vmatpush3.bf16.msra.mxu0 %v894_v9  ;;  %820 = vmatpush3.bf16.msra.mxu1 %v895_v10  ;;  %v337_v9 = vsub.s32 0, %v336_v8  ;;  %v333_v10 = vld [vmem:[%s1290_s5 + $0x1] sm:$0x3]  ;;  %s1106_s5 = smov [#allocation11]  }
  0x6f   :  { %801 = vmatprep.subr.bf16.mxu0 %v1103_v0  ;;  %821 = vmatprep.subr.bf16.mxu1 %v1103_v0  ;;  %s693_s12 = sshll.u32 %s1106_s5, 4  ;;  %s694_s12 = int_to_ptr.vmem [resolvable:$true] %s693_s12 }
  0x70   :  { %s1062_s13 = scalar_lea.vmem %s694_s12, 128  ;;  %p1067_p13 = scmp.lt.s32.totalorder %s694_s12, %s694_s12 }
  0x71   :  { %p1063_p12 = scmp.ne.s32.totalorder %s694_s12, %s1062_s13  ;;  %p1068_p0 = scmp.lt.s32.totalorder %s1062_s13, %s1062_s13 }
  0x72   :  { %802 = vmatpush3.bf16.msra.mxu0 %v896_v11  ;;  %822 = vmatpush3.bf16.msra.mxu1 %v897_v12  ;;  %v338_v11 = vrot.slane %v333_v10, %v337_v9 }
  0x73   :  { %803 = vmatprep.subr.bf16.mxu0 %v1103_v0  ;;  %823 = vmatprep.subr.bf16.mxu1 %v1103_v0  ;;  %p1069_p1 = por %p1068_p0, %p1067_p13 }
  0x75   :  { %p1070_p2 = pnand %p1069_p1, %p1063_p12 }
  0x76   :  { %804 = vmatpush3.bf16.msra.mxu0 %v898_v13  ;;  %824 = vmatpush3.bf16.msra.mxu1 %v899_v14 }
  0x77   :  { %805 = vmatprep.subr.bf16.mxu0 %v1103_v0  ;;  %825 = vmatprep.subr.bf16.mxu1 %v1103_v0 }
  0x7a   :  { %806 = vmatpush3.bf16.msra.mxu0 %v900_v15  ;;  %826 = vmatpush3.bf16.msra.mxu1 %v901_v16 }
  0x7b   :  { %425 = vmatprep.subr.bf16.mxu0 %v904_v19  ;;  %831 = vmatprep.subr.bf16.mxu1 %v1103_v0 }
  0x7d   :  { %808 = vmatmul.mubr.bf16.vlgmr.msra.gmra.mrb[0].mxu0 %v1240_v20  ;;  %828 = vmatmul.mubr.bf16.vlgmr.msra.gmra.mrb[0].mxu1 %v91_v21 }
  0x7e   :  { %426 = vmatpush1.bf16.msra.mxu0 %v902_v22  ;;  %832 = vmatpush3.bf16.msra.mxu1 %v908_v24  ;;  %v341_v24 = vsub.s32 1, %v336_v8 }
  0x7f   :  { %427 = vmatprep.subr.bf16.mxu0 %v907_v23  ;;  %833 = vmatprep.subr.bf16.mxu1 %v1103_v0 }
  0x80   :  { %847 = vmatprep.mubr.msk.bf16.mxu1 %vm1104_vm0, %v1103_v0  ;;  %457 = vmatprep.mubr.bf16.mxu0 %v1105_v44 }
  0x82   :  { %428 = vmatpush1.bf16.msra.mxu0 %v905_v25  ;;  %834 = vmatpush3.bf16.msra.mxu1 %v912_v27  ;;  %v342_v25 = vrot.slane %v333_v10, %v341_v24 }
  0x83   :  { %429 = vmatprep.subr.bf16.mxu0 %v911_v26  ;;  %835 = vmatprep.subr.bf16.mxu1 %v1103_v0 }
  0x86   :  { %430 = vmatpush1.bf16.msra.mxu0 %v909_v28  ;;  %836 = vmatpush3.bf16.msra.mxu1 %v916_v30 }
  0x87   :  { %431 = vmatprep.subr.bf16.mxu0 %v915_v29  ;;  %837 = vmatprep.subr.bf16.mxu1 %v1103_v0 }
  0x8a   :  { %432 = vmatpush1.bf16.msra.mxu0 %v913_v31  ;;  %838 = vmatpush3.bf16.msra.mxu1 %v920_v33 }
  0x8b   :  { %433 = vmatprep.subr.bf16.mxu0 %v919_v32  ;;  %839 = vmatprep.subr.bf16.mxu1 %v1103_v0 }
  0x8e   :  { %434 = vmatpush1.bf16.msra.mxu0 %v917_v34  ;;  %840 = vmatpush3.bf16.msra.mxu1 %v924_v36 }
  0x8f   :  { %435 = vmatprep.subr.bf16.mxu0 %v923_v35  ;;  %841 = vmatprep.subr.bf16.mxu1 %v1103_v0 }
  0x92   :  { %436 = vmatpush1.bf16.msra.mxu0 %v921_v37  ;;  %842 = vmatpush3.bf16.msra.mxu1 %v928_v39 }
  0x93   :  { %437 = vmatprep.subr.bf16.mxu0 %v927_v38  ;;  %843 = vmatprep.subr.bf16.mxu1 %v1103_v0 }
  0x96   :  { %438 = vmatpush1.bf16.msra.mxu0 %v925_v40  ;;  %844 = vmatpush3.bf16.msra.mxu1 %v932_v42 }
  0x97   :  { %439 = vmatprep.subr.bf16.mxu0 %v931_v41  ;;  %845 = vmatprep.subr.bf16.mxu1 %v1103_v0 }
  0x9a   :  { %440 = vmatpush1.bf16.msra.mxu0 %v929_v43  ;;  %846 = vmatpush3.bf16.msra.mxu1 %v933_v45 }
  0x9b   :  { %851 = vmatprep.subr.bf16.mxu0 %v1103_v0 }
  0x9d   :  { %458 = vmatmul.mubr.bf16.vlgmr.msra.gmra.mrb[4].mxu0 %v91_v21  ;;  %848 = vmatmul.mubr.bf16.vlgmr.msra.gmra.mrb[4].mxu1 %v1240_v20 }
  0x9e   :  { %867 = vmatprep.mubr.msk.bf16.mxu0 %vm1104_vm0, %v1103_v0  ;;  %852 = vmatpush3.bf16.msra.mxu0 %v934_v46 }
  0x9f   :  { %853 = vmatprep.subr.bf16.mxu0 %v1103_v0 }
  0xa2   :  { %854 = vmatpush3.bf16.msra.mxu0 %v935_v47 }
  0xa3   :  { %855 = vmatprep.subr.bf16.mxu0 %v1103_v0 }
  0xa6   :  { %856 = vmatpush3.bf16.msra.mxu0 %v936_v48 }
  0xa7   :  { %857 = vmatprep.subr.bf16.mxu0 %v1103_v0 }
  0xaa   :  { %858 = vmatpush3.bf16.msra.mxu0 %v937_v49 }
  0xab   :  { %859 = vmatprep.subr.bf16.mxu0 %v1103_v0 }
  0xae   :  { %860 = vmatpush3.bf16.msra.mxu0 %v938_v50 }
  0xaf   :  { %861 = vmatprep.subr.bf16.mxu0 %v1103_v0 }
  0xb2   :  { %862 = vmatpush3.bf16.msra.mxu0 %v939_v51 }
  0xb3   :  { %863 = vmatprep.subr.bf16.mxu0 %v1103_v0 }
  0xb6   :  { %864 = vmatpush3.bf16.msra.mxu0 %v940_v52 }
  0xb7   :  { %865 = vmatprep.subr.bf16.mxu0 %v1103_v0 }
  0xba   :  { %866 = vmatpush3.bf16.msra.mxu0 %v941_v53 }
 0x150   :  { %v207_v54 = vpop.f32.mrb[0].mxu0  ;;  %v295_v55 = vpop.f32.mrb[0].mxu1 }
 0x151   :  { %v809_v57 = vpop.f32.mrb[1].mxu0  ;;  %v296_v58 = vadd.f32 %v295_v55, %v207_v54  ;;  %v829_v59 = vpop.f32.mrb[1].mxu1 }
 0x152   :  { %v210_v60 = vpop.f32.mrb[2].mxu0  ;;  %v298_v61 = vpop.f32.mrb[2].mxu1 }
 0x153   :  { %v810_v62 = vpop.f32.mrb[3].mxu0  ;;  %v308_v63 = vadd.f32 %v720_v56, %v296_v58  ;;  %v830_v1 = vpop.f32.mrb[3].mxu1 }
 0x155   :  { %v721_v2 = vmul.f32 -1.442695, %v308_v63 }
 0x157   :  { %942 = vpow2.f32 %v721_v2 }
 0x161   :  { %v943_v3 = vpop.eup %942 }
 0x162   :  { %v312_v4 = vadd.f32 1.0, %v943_v3 }
 0x164   :  { %944 = vrcp.f32 %v312_v4 }
 0x16e   :  { %v945_v0 = vpop.eup %944 }
 0x16f   :  { %v315_v5 = vmul.f32 %v945_v0, %v1234_v17 }
 0x170   :  { %v459_v12 = vpop.f32.mrb[4].mxu0  ;;  %v564_v18 = vpop.f32.mrb[4].mxu1 }
 0x171   :  { %v316_v6 = vpack.c.bf16 %v315_v5, %v315_v5  ;;  %v461_v13 = vpop.f32.mrb[5].mxu0  ;;  %v460_v14 = vadd.f32 %v459_v12, %v338_v11  ;;  %v849_v20 = vpop.f32.mrb[5].mxu1 }
 0x172   :  { %v463_v15 = vpop.f32.mrb[6].mxu0  ;;  %v567_v21 = vpop.f32.mrb[6].mxu1  ;;  %v462_v27 = vadd.f32 %v461_v13, %v342_v25 }
 0x173   :  { %868 = vmatmul.mubr.bf16.vlgmr.msra.gmra.mrb[8].mxu0 %v316_v6  ;;  %v464_v16 = vpop.f32.mrb[7].mxu0  ;;  %v570_v19 = vadd.f32 %v564_v18, %v460_v14  ;;  %v850_v22 = vpop.f32.mrb[7].mxu1 }
 0x175   :  { %v754_v23 = vmul.f32 -1.442695, %v570_v19 }
 0x177   :  { %946 = vpow2.f32 %v754_v23 }
 0x181   :  { %v947_v26 = vpop.eup %946 }
 0x182   :  { %v679_v29 = vadd.f32 1.0, %v947_v26 }
 0x246   :  { %v669_v28 = vpop.f32.mrb[8].mxu0 }
 0x247   :  { %v675_v30 = vadd.f32 %v669_v28, %v462_v27  ;;  %v869_v31 = vpop.f32.mrb[9].mxu0 }
 0x248   :  { %v672_v32 = vpop.f32.mrb[10].mxu0 }
 0x249   :  { %948 = vtanh.f32 %v675_v30  ;;  %v870_v33 = vpop.f32.mrb[11].mxu0 }
 0x24a   :  { %950 = vrcp.f32 %v679_v29 }
 0x253   :  { %v949_v34 = vpop.eup %948 }
 0x254   :  { %v683_v35 = vsub.f32 %v949_v34, %v1234_v17  ;;  %v951_v36 = vpop.eup %950 }
 0x256   :  { %v684_v37 = vmul.f32 %v951_v36, %v683_v35 }
 0x258   :  { %v685_v38 = vadd.f32 %v684_v37, %v1234_v17 }
 0x25a   :  { %686 = vst [vmem:[#allocation11] sm:$0xff] %v685_v38 }
 0x25b   :  { %1073 = shalt.err (!%p1070_p2)
}
 0x25c   :  { %s1074_s16 = scalar_lea.hbm %s1291_s6, 128 }
 0x25d   :  { %p1075_p3 = scmp.ne.s32.totalorder %s1291_s6, %s1074_s16  ;;  %p1078_p4 = scmp.lt.u32.totalorder %s1074_s16, %s1291_s6 }
 0x25f   :  { %p1080_p5 = pnand %p1078_p4, %p1075_p3 }
 0x261   :  { %1083 = shalt.err (!%p1080_p5)
}
 0x262   :  { %696 = dma.vmem_to_hbm [thread:$0]  %s694_s12, 128, %s1291_s6, [#allocation4]  }
 0x263   :  { %1090 = dma.done.wait [#allocation4], 128  }
 0x264   :  { %1091 = vsyncadd [#allocation4], 4294967168 }
 0x265   :  { %700 = vsyncpa [#allocation3], 1 }
 0x266   :  { %701 = vsyncpa [#allocation6], 1 }
 0x267   :  { %702 = vsyncpa [#allocation9], 1 }
 0x268   :  { %703 = vsyncpa [#allocation4], 1 }

</bundles_post_ra>
